<compile_context>
chip_gen: v6e
topology: v6e:2x2x1
jax: 0.10.0
libtpu: 0.0.40
codegen_flags: <defaults>
</compile_context>

<pallas_src>
import functools

import numpy as np
import jax
import jax.numpy as jnp
from jax.experimental import pallas as pl
from jax.experimental.pallas import tpu as pltpu


def _round_up(v, m):
    return (v + m - 1) // m * m


def _pick_tile(padded_dim, cap, unit=128):
    """Largest tile <= cap that divides padded_dim (padded_dim % unit == 0)."""
    t = min(padded_dim, cap)
    while padded_dim % t:
        t -= unit
    return t


# ------------------------- tiled linear (+bias/ReLU) -------------------------

def _linear_kernel(a_ref, w_ref, b_ref, o_ref, *, apply_relu):
    k = pl.program_id(2)

    @pl.when(k == 0)
    def _():
        o_ref[...] = jnp.zeros_like(o_ref)

    # accumulate straight into the resident output block (no scratch copy)
    o_ref[...] += jnp.dot(a_ref[...], w_ref[...],
                          preferred_element_type=jnp.float32)

    @pl.when(k == pl.num_programs(2) - 1)
    def _():
        y = o_ref[...] + b_ref[...]
        if apply_relu:
            y = jnp.maximum(y, 0.0)
        o_ref[...] = y


def prep_linear(W, b):
    """One-time weight prep: pad to (8,128)-friendly shapes and cast to bf16."""
    W = jnp.asarray(W, jnp.float32)
    b = jnp.asarray(b, jnp.float32).reshape(1, -1)
    din, dout = W.shape
    Kp, Np = _round_up(din, 128), _round_up(dout, 128)
    return {
        "Wp": jnp.pad(W, ((0, Kp - din), (0, Np - dout))).astype(jnp.bfloat16),
        "bp": jnp.pad(b, ((0, 0), (0, Np - dout))),
        "din": din,
        "dout": dout,
    }


def linear(a, layer, apply_relu=False):
    """o = a @ W + b (+ReLU).  bf16 MXU operands, f32 accumulation/epilogue."""
    a = jnp.asarray(a, jnp.float32)
    M, K = a.shape
    Wp, bp = layer["Wp"], layer["bp"]
    Kp, Np = Wp.shape
    tm = min(512, _round_up(M, 16))            # 16-row multiples for bf16 packing
    Mp = _round_up(M, tm)
    tk = _pick_tile(Kp, 1024)
    tn = _pick_tile(Np, 512)
    ap = jnp.pad(a, ((0, Mp - M), (0, Kp - K))).astype(jnp.bfloat16)

    out = pl.pallas_call(
        functools.partial(_linear_kernel, apply_relu=apply_relu),
        out_shape=jax.ShapeDtypeStruct((Mp, Np), jnp.float32),
        grid_spec=pltpu.PrefetchScalarGridSpec(
            num_scalar_prefetch=0,
            grid=(Mp // tm, Np // tn, Kp // tk),
            in_specs=[pl.BlockSpec((tm, tk), lambda i, j, k: (i, k)),
                      pl.BlockSpec((tk, tn), lambda i, j, k: (k, j)),
                      pl.BlockSpec((1, tn), lambda i, j, k: (0, j))],
            out_specs=pl.BlockSpec((tm, tn), lambda i, j, k: (i, j))),
        compiler_params=pltpu.CompilerParams(
            dimension_semantics=("parallel", "parallel", "arbitrary")),
    )(ap, Wp, bp)
    return out[:M, :layer["dout"]]


# ------------------------- fused, tiled GCNConv + ReLU -----------------------

def _gcn_kernel(a_ref, x_ref, w_ref, b_ref, o_ref):
    k = pl.program_id(1)

    @pl.when(k == 0)
    def _():
        o_ref[...] = jnp.zeros_like(o_ref)

    # x@W per node K-tile, downcast fused into the MXU output (bf16 out),
    # then A_hat row-tile matmul accumulated into the resident output block.
    xw = jnp.dot(x_ref[...], w_ref[...], preferred_element_type=jnp.bfloat16)
    o_ref[...] += jnp.dot(a_ref[...], xw, preferred_element_type=jnp.float32)

    @pl.when(k == pl.num_programs(1) - 1)
    def _():
        o_ref[...] = jnp.maximum(o_ref[...] + b_ref[...], 0.0)


def gcn_conv_relu(x, a_hat, layer):
    """ReLU(A_hat @ (x @ W) + b), tiled over A_hat rows (parallel) and the
    node contraction axis (arbitrary); VMEM bounded independent of N."""
    N, F = x.shape
    Wp, bp = layer["Wp"], layer["bp"]
    Fi_p, Fo_p = Wp.shape
    tile = 256 if N > 256 else _round_up(N, 128)
    Nn = _round_up(N, tile)
    xp = jnp.pad(jnp.asarray(x, jnp.float32),
                 ((0, Nn - N), (0, Fi_p - F))).astype(jnp.bfloat16)
    ap = jnp.pad(jnp.asarray(a_hat, jnp.float32),
                 ((0, Nn - N), (0, Nn - N))).astype(jnp.bfloat16)

    out = pl.pallas_call(
        _gcn_kernel,
        out_shape=jax.ShapeDtypeStruct((Nn, Fo_p), jnp.float32),
        grid_spec=pltpu.PrefetchScalarGridSpec(
            num_scalar_prefetch=0,
            grid=(Nn // tile, Nn // tile),
            in_specs=[pl.BlockSpec((tile, tile), lambda i, k: (i, k)),   # A_hat
                      pl.BlockSpec((tile, Fi_p), lambda i, k: (k, 0)),   # x
                      pl.BlockSpec((Fi_p, Fo_p), lambda i, k: (0, 0)),   # W
                      pl.BlockSpec((1, Fo_p), lambda i, k: (0, 0))],     # b
            out_specs=pl.BlockSpec((tile, Fo_p), lambda i, k: (i, 0))),
        compiler_params=pltpu.CompilerParams(
            dimension_semantics=("parallel", "arbitrary")),
    )(ap, xp, Wp, bp)
    return out[:N, :layer["dout"]]


def normalized_adjacency(edge_index, num_nodes):
    """D^-1/2 (A + I) D^-1/2 built on-device.  Topology changes after each
    pooling stage, so it is rebuilt per stage (cacheable for static graphs)."""
    ei = jnp.asarray(np.asarray(edge_index), jnp.int32)
    A = jnp.zeros((num_nodes, num_nodes), jnp.float32)
    A = A.at[ei[1], ei[0]].set(1.0)                      # A[dst, src]
    diag = jnp.arange(num_nodes)
    A = A.at[diag, diag].set(1.0)                        # self loops
    dinv = jax.lax.rsqrt(jnp.sum(A, axis=1))             # deg >= 1
    return A * dinv[:, None] * dinv[None, :]


# ----------------------------- segment softmax -------------------------------

def _seg_softmax_kernel(raw_ref, dst_ref, o_ref, *, n_nodes):
    raw = raw_ref[...]                                   # (1, Ep) f32
    dst = dst_ref[...]                                   # (1, Ep) int32 (pad=-1)
    valid = dst >= 0
    ep = raw.shape[1]
    node_id = jax.lax.broadcasted_iota(jnp.int32, (n_nodes, ep), 0)
    sel = node_id == dst                                 # (Nn, Ep) built in-kernel
    per_node_max = jnp.max(jnp.where(sel, raw, -3e38), axis=1, keepdims=True)
    e_max = jnp.max(jnp.where(sel, per_node_max, -3e38), axis=0, keepdims=True)
    e_max = jnp.where(valid, e_max, 0.0)                 # mask padded edge lanes
    ex = jnp.where(valid, jnp.exp(raw - e_max), 0.0)     # EUP
    per_node_sum = jnp.sum(jnp.where(sel, ex, 0.0), axis=1, keepdims=True)
    e_sum = jnp.sum(jnp.where(sel, per_node_sum, 0.0), axis=0, keepdims=True)
    o_ref[...] = ex * pl.reciprocal(jnp.maximum(e_sum, 1e-30), approx=True)


def segment_softmax(raw, dst, num_nodes):
    """PyG `softmax(raw, index=dst)`; only two (1,E) rows are DMA'd."""
    E = int(raw.shape[0])
    Ep = _round_up(E, 128)
    Nn = _round_up(max(int(num_nodes), 1), 8)
    raw_row = jnp.pad(jnp.asarray(raw, jnp.float32).reshape(1, E),
                      ((0, 0), (0, Ep - E)))
    dst_row = jnp.pad(jnp.asarray(np.asarray(dst), jnp.int32).reshape(1, E),
                      ((0, 0), (0, Ep - E)), constant_values=-1)
    # TODO(synk): tile over edge blocks (two-pass combine) for very large E.
    out = pl.pallas_call(
        functools.partial(_seg_softmax_kernel, n_nodes=Nn),
        out_shape=jax.ShapeDtypeStruct((1, Ep), jnp.float32),
    )(raw_row, dst_row)
    return out[0, :E]


# -------------------------- global max / mean pool ---------------------------

def _pool_kernel(x_ref, bid_ref, gmp_ref, gap_ref):
    g = pl.program_id(0)
    x = x_ref[...]                                       # (Nn, Fp) f32
    sel = bid_ref[...] == g                              # (Nn, 1), pad rows = -1
    self_f = sel.astype(jnp.float32)
    cnt = jnp.sum(self_f, axis=0, keepdims=True)         # (1, 1)
    ssum = jnp.sum(x * self_f, axis=0, keepdims=True)    # (1, Fp) exact f32 sum
    gap_ref[...] = (ssum / jnp.maximum(cnt, 1.0)).reshape(gap_ref.shape)
    gmp_ref[...] = jnp.max(jnp.where(sel, x, -3e38), axis=0,
                           keepdims=True).reshape(gmp_ref.shape)


def global_max_mean_pool(x, batch, num_graphs):
    """PyG global_max_pool / global_mean_pool, grid over graphs (parallel)."""
    N, F = x.shape
    Nn = _round_up(N, 8)
    Fp = _round_up(F, 128)
    xp = jnp.pad(jnp.asarray(x, jnp.float32), ((0, Nn - N), (0, Fp - F)))
    bid = jnp.pad(jnp.asarray(np.asarray(batch), jnp.int32).reshape(N, 1),
                  ((0, Nn - N), (0, 0)), constant_values=-1)
    G = int(num_graphs)
    gmp, gap = pl.pallas_call(
        _pool_kernel,
        out_shape=(jax.ShapeDtypeStruct((G, 1, Fp), jnp.float32),
                   jax.ShapeDtypeStruct((G, 1, Fp), jnp.float32)),
        grid_spec=pltpu.PrefetchScalarGridSpec(
            num_scalar_prefetch=0,
            grid=(G,),
            in_specs=[pl.BlockSpec((Nn, Fp), lambda g: (0, 0)),
                      pl.BlockSpec((Nn, 1), lambda g: (0, 0))],
            out_specs=(pl.BlockSpec((1, 1, Fp), lambda g: (g, 0, 0)),
                       pl.BlockSpec((1, 1, Fp), lambda g: (g, 0, 0)))),
        compiler_params=pltpu.CompilerParams(
            dimension_semantics=("parallel",)),
    )(xp, bid)
    return gmp[:, 0, :F], gap[:, 0, :F]


# --------------------- EdgePooling cluster aggregation -----------------------

def _cluster_pool_kernel(x_ref, cl_ref, sc_ref, o_ref):
    cl = cl_ref[...]                                     # (1, Nn) int32 (pad=-1)
    cp = o_ref.shape[0]
    cid = jax.lax.broadcasted_iota(jnp.int32, (cp, cl.shape[1]), 0)
    sel = (cid == cl).astype(jnp.bfloat16)               # exact one-hot in bf16
    ssum = jnp.dot(sel, x_ref[...], preferred_element_type=jnp.float32)
    o_ref[...] = ssum * sc_ref[...]                      # fold per-cluster score


def cluster_pool(x, cluster, score, n_clusters):
    """new_x[c] = score[c] * sum_{i: cluster[i]==c} x[i] (EdgePooling merge)."""
    N, F = x.shape
    Nn = _round_up(N, 128)
    Fp = _round_up(F, 128)
    Cp = _round_up(max(int(n_clusters), 1), 8)
    xp = jnp.pad(jnp.asarray(x, jnp.float32),
                 ((0, Nn - N), (0, Fp - F))).astype(jnp.bfloat16)
    cl = jnp.pad(jnp.asarray(cluster, jnp.int32).reshape(1, N),
                 ((0, 0), (0, Nn - N)), constant_values=-1)
    sc = jnp.pad(jnp.asarray(score, jnp.float32).reshape(-1, 1),
                 ((0, Cp - int(n_clusters)), (0, 0)))
    out = pl.pallas_call(
        _cluster_pool_kernel,
        out_shape=jax.ShapeDtypeStruct((Cp, Fp), jnp.float32),
    )(xp, cl, sc)
    return out[:int(n_clusters), :F]


# ------------------------------- EdgePooling ---------------------------------

def _greedy_merge(edge_index, score, num_nodes):
    """PyG EdgePooling.__merge_edges__ greedy matching (sequential, host)."""
    order = np.argsort(-score, kind="stable")
    cluster = np.full(num_nodes, -1, dtype=np.int64)
    remaining = np.ones(num_nodes, dtype=bool)
    new_scores = []
    i = 0
    for e in order:
        s = int(edge_index[0, e])
        t = int(edge_index[1, e])
        if not remaining[s] or not remaining[t]:
            continue
        cluster[s] = i
        remaining[s] = False
        if s != t:
            cluster[t] = i
            remaining[t] = False
        new_scores.append(float(score[e]))
        i += 1
    for r in np.where(remaining)[0]:
        cluster[r] = i
        new_scores.append(1.0)                           # unmatched: score 1
        i += 1
    return cluster, np.asarray(new_scores, np.float32), i


def edge_pool(x, edge_index, batch, layer):
    """PyG EdgePooling: score = softmax(lin([x_s,x_d]), by dst) + 0.5,
    greedy edge contraction, merged feature = (x_i + x_j) * score."""
    N, F = x.shape
    ei = np.asarray(edge_index)
    src = jnp.asarray(ei[0], jnp.int32)
    dst = jnp.asarray(ei[1], jnp.int32)
    e_feat = jnp.concatenate([x[src], x[dst]], axis=1)           # (E, 2F) gather glue
    raw = linear(e_feat, layer)[:, 0]                            # (E,)
    score = segment_softmax(raw, ei[1], N) + 0.5                 # (E,)
    score_np = np.asarray(jax.device_get(score), np.float32)     # one sync / stage
    # TODO(synk): greedy contraction is sequential & data-dependent (dynamic
    # output node count) — host-side NumPy; downstream shapes are not bucketed,
    # so distinct cluster counts recompile the later (small) kernels.
    cluster, new_score, n_clusters = _greedy_merge(ei, score_np, N)
    new_x = cluster_pool(x, cluster, new_score, n_clusters)      # MXU scatter-add
    new_ei = np.unique(cluster[ei], axis=1)                      # coalesce
    new_batch = np.zeros(n_clusters, np.int64)
    new_batch[cluster] = np.asarray(batch)
    return new_x, new_ei, new_batch


# ----------------------------------- Net -------------------------------------

def init_params(n_feats, key):
    ks = jax.random.split(key, 12)

    def lin(kw, kb, din, dout, scale=0.1):
        W = scale * jax.random.normal(kw, (din, dout), jnp.float32)
        b = scale * jax.random.normal(kb, (dout,), jnp.float32)
        return prep_linear(W, b)                         # pad + bf16 cast once

    return {
        "emb": lin(ks[0], ks[1], n_feats, n_feats),      # atom_embedding
        "conv1": lin(ks[2], ks[3], n_feats, n_feats),    # conv1
        "pool1": lin(ks[4], ks[5], 2 * n_feats, 1),      # pool1.lin
        "conv2": lin(ks[6], ks[7], n_feats, n_feats),    # conv2
        "pool2": lin(ks[8], ks[9], 2 * n_feats, 1),      # pool2.lin
        "lin": lin(ks[10], ks[11], 2 * n_feats, 1),      # final linear
    }


def net_forward(params, x, edge_index, batch=None):
    x = jnp.asarray(x, jnp.float32)
    if x.ndim == 3:
        # Batch.from_data_list equivalent: concat nodes, offset edge indices.
        G, n, F = x.shape
        edge_index = np.concatenate(
            [np.asarray(edge_index[g]) + g * n for g in range(G)], axis=1)
        batch = np.repeat(np.arange(G), n)
        x = x.reshape(G * n, F)
    if batch is None:
        batch = np.zeros(x.shape[0], np.int64)

    shape = x.shape
    x = x.reshape(-1, shape[-1])
    x = linear(x, params["emb"])                         # atom_embedding
    x = x.reshape(shape)
    if x.ndim >= 2 and x.shape[1] == 1:                  # torch .squeeze(1)
        x = jnp.squeeze(x, axis=1)

    num_graphs = int(np.max(np.asarray(batch))) + 1

    a_hat = normalized_adjacency(edge_index, x.shape[0])
    x = gcn_conv_relu(x, a_hat, params["conv1"])
    x, edge_index, batch = edge_pool(x, edge_index, batch, params["pool1"])
    gmax, gmean = global_max_mean_pool(x, batch, num_graphs)
    x1 = jnp.concatenate([gmax, gmean], axis=1)

    a_hat = normalized_adjacency(edge_index, x.shape[0])
    x = gcn_conv_relu(x, a_hat, params["conv2"])
    x, edge_index, batch = edge_pool(x, edge_index, batch, params["pool2"])
    gmax, gmean = global_max_mean_pool(x, batch, num_graphs)
    x2 = jnp.concatenate([gmax, gmean], axis=1)

    out = linear(x1 + x2, params["lin"])                 # (num_graphs, 1)
    return out[:, 0]                                     # torch .squeeze(1)


# ---------------------------------- main --------------------------------------

if __name__ == "__main__":
    n_feats = 32
    nodes_per_graph = 8
    num_graphs = 2

    key = jax.random.PRNGKey(0)
    kp, kx = jax.random.split(key)
    params = init_params(n_feats, kp)

    # Two ring graphs (bidirectional edges), local node indices per graph.
    src, dst = [], []
    for i in range(nodes_per_graph):
        j = (i + 1) % nodes_per_graph
        src += [i, j]
        dst += [j, i]
    ei_local = np.stack([np.asarray(src), np.asarray(dst)], axis=0)   # (2, 16)
    edge_index = np.stack([ei_local, ei_local], axis=0)               # (2, 2, 16)

    x = jax.random.normal(kx, (num_graphs, nodes_per_graph, n_feats), jnp.float32)

    out = net_forward(params, x, edge_index)
    out = jax.block_until_ready(out)
    assert out.shape == (num_graphs,), out.shape
    print("KERNEL_OK")
</pallas_src>

<mosaic_0001>
module attributes {stable_mosaic.version = 11 : i64} {
  func.func @_linear_kernel(%arg0: i32, %arg1: i32, %arg2: i32, %arg3: memref<16x128xbf16, #tpu.memory_space<vmem>>, %arg4: memref<128x128xbf16, #tpu.memory_space<vmem>>, %arg5: memref<1x128xf32, #tpu.memory_space<vmem>>, %arg6: memref<16x128xf32, #tpu.memory_space<vmem>>) attributes {dimension_semantics = [#tpu.dimension_semantics<parallel>, #tpu.dimension_semantics<parallel>, #tpu.dimension_semantics<arbitrary>], iteration_bounds = array<i64: 1, 1, 1>, scalar_prefetch = 0 : i64, scratch_operands = 0 : i64, tpu.core_type = #tpu.core_type<tc>, window_params = [{transform_indices = @transform_0, window_bounds = array<i64: 16, 128>}, {transform_indices = @transform_1, window_bounds = array<i64: 128, 128>}, {transform_indices = @transform_2, window_bounds = array<i64: 1, 128>}, {transform_indices = @transform_3, window_bounds = array<i64: 16, 128>}]} {
    %c0_i32 = arith.constant 0 : i32
    %0 = arith.cmpi eq, %arg2, %c0_i32 : i32
    %1 = arith.extui %0 : i1 to i32
    %c0_i32_0 = arith.constant 0 : i32
    %2 = arith.cmpi ne, %1, %c0_i32_0 : i32
    scf.if %2 {
      %cst_10 = arith.constant 0.000000e+00 : f32
      %12 = vector.broadcast %cst_10 : f32 to vector<16x128xf32>
      %c0_11 = arith.constant 0 : index
      %c0_12 = arith.constant 0 : index
      %13 = vector.load %arg6[%c0_11, %c0_12] : memref<16x128xf32, #tpu.memory_space<vmem>>, vector<16x128xf32>
      tpu.vector_store %arg6[%c0_11, %c0_12], %12 {strides = array<i32>} : memref<16x128xf32, #tpu.memory_space<vmem>>, vector<16x128xf32>,
    } else {
    }
    %c0 = arith.constant 0 : index
    %c0_1 = arith.constant 0 : index
    %3 = vector.load %arg6[%c0, %c0_1] : memref<16x128xf32, #tpu.memory_space<vmem>>, vector<16x128xf32>
    %c0_2 = arith.constant 0 : index
    %c0_3 = arith.constant 0 : index
    %4 = vector.load %arg3[%c0_2, %c0_3] : memref<16x128xbf16, #tpu.memory_space<vmem>>, vector<16x128xbf16>
    %c0_4 = arith.constant 0 : index
    %c0_5 = arith.constant 0 : index
    %5 = vector.load %arg4[%c0_4, %c0_5] : memref<128x128xbf16, #tpu.memory_space<vmem>>, vector<128x128xbf16>
    %cst = arith.constant dense<0.000000e+00> : vector<16x128xf32>
    %6 = tpu.matmul %4, %5, %cst {dimension_numbers = #tpu.dot_dimension_numbers<[1], [0], [0], [1], [0, 0, 1, 1], [], []>} : vector<16x128xbf16>, vector<128x128xbf16>, vector<16x128xf32> -> vector<16x128xf32>
    %7 = arith.addf %3, %6 : vector<16x128xf32>
    %c0_6 = arith.constant 0 : index
    %c0_7 = arith.constant 0 : index
    %8 = vector.load %arg6[%c0_6, %c0_7] : memref<16x128xf32, #tpu.memory_space<vmem>>, vector<16x128xf32>
    tpu.vector_store %arg6[%c0_6, %c0_7], %7 {strides = array<i32>} : memref<16x128xf32, #tpu.memory_space<vmem>>, vector<16x128xf32>,
    %c0_i32_8 = arith.constant 0 : i32
    %9 = arith.cmpi eq, %arg2, %c0_i32_8 : i32
    %10 = arith.extui %9 : i1 to i32
    %c0_i32_9 = arith.constant 0 : i32
    %11 = arith.cmpi ne, %10, %c0_i32_9 : i32
    scf.if %11 {
      %c0_10 = arith.constant 0 : index
      %c0_11 = arith.constant 0 : index
      %12 = vector.load %arg6[%c0_10, %c0_11] : memref<16x128xf32, #tpu.memory_space<vmem>>, vector<16x128xf32>
      %c0_12 = arith.constant 0 : index
      %c0_13 = arith.constant 0 : index
      %13 = vector.load %arg5[%c0_12, %c0_13] : memref<1x128xf32, #tpu.memory_space<vmem>>, vector<1x128xf32>
      %14 = vector.broadcast %13 : vector<1x128xf32> to vector<16x128xf32>
      %15 = arith.addf %12, %14 : vector<16x128xf32>
      %c0_14 = arith.constant 0 : index
      %c0_15 = arith.constant 0 : index
      %16 = vector.load %arg6[%c0_14, %c0_15] : memref<16x128xf32, #tpu.memory_space<vmem>>, vector<16x128xf32>
      tpu.vector_store %arg6[%c0_14, %c0_15], %15 {strides = array<i32>} : memref<16x128xf32, #tpu.memory_space<vmem>>, vector<16x128xf32>,
    } else {
    }
    return
  }
  func.func @transform_0(%arg0: i32, %arg1: i32, %arg2: i32) -> (i32, i32) {
    %c0_i32 = arith.constant 0 : i32
    return %arg0, %arg2 : i32, i32
  }
  func.func @transform_1(%arg0: i32, %arg1: i32, %arg2: i32) -> (i32, i32) {
    %c0_i32 = arith.constant 0 : i32
    return %arg2, %arg1 : i32, i32
  }
  func.func @transform_2(%arg0: i32, %arg1: i32, %arg2: i32) -> (i32, i32) {
    %c0_i32 = arith.constant 0 : i32
    %c0_i32_0 = arith.constant 0 : i32
    return %c0_i32, %arg1 : i32, i32
  }
  func.func @transform_3(%arg0: i32, %arg1: i32, %arg2: i32) -> (i32, i32) {
    %c0_i32 = arith.constant 0 : i32
    return %arg0, %arg1 : i32, i32
  }
}

</mosaic_0001>

<bundles_post_ra>
// kernel: tpu_custom_call.1
= control target key start
LH: loop header
LB: loop body
LE: loop exit
PB: predicated region body
PF: predicated region fallthrough
CT: control target
= control target key end

     0   :  { %8 = vsyncpa [#allocation3], 0  ;;  %s367_s0 = inlined_call_operand.hbm [shape: bf16[16,128], index: 0, kind: input, shape index: {}]   ;;  %s368_s1 = inlined_call_operand.hbm [shape: bf16[128,128], index: 1, kind: input, shape index: {}]   ;;  %s369_s2 = inlined_call_operand.vmem [shape: f32[1,128], index: 2, kind: input, shape index: {}]   ;;  %s370_s3 = inlined_call_operand.hbm [shape: f32[16,128], index: 3, kind: output, shape index: {}]  }
   0x1   :  { %9 = vsyncpa [#allocation6], 0 }
   0x2   :  { %10 = vsyncpa [#allocation4], 0  ;;  %s326_s12 = smov [#allocation2]  }
   0x3   :  { %s16_s13 = sshll.u32 %s326_s12, 4  ;;  %s17_s13 = int_to_ptr.vmem [resolvable:$true] %s16_s13 }
   0x4   :  { %s268_s14 = scalar_lea.vmem %s17_s13, 128  ;;  %p273_p1 = scmp.lt.s32.totalorder %s17_s13, %s17_s13 }
   0x5   :  { %p269_p0 = scmp.ne.s32.totalorder %s17_s13, %s268_s14  ;;  %p274_p2 = scmp.lt.s32.totalorder %s268_s14, %s268_s14 }
   0x7   :  { %p275_p3 = por %p274_p2, %p273_p1 }
   0x9   :  { %p276_p4 = pnand %p275_p3, %p269_p0 }
   0xb   :  { %279 = shalt.err (!%p276_p4)
}
   0xc   :  { %s327_s15 = smov 64   ;;  %s328_s16 = smov 4  }
   0xd   :  { %22 = dma.hbm_to_vmem [thread:$0]  %s367_s0, 128, %s17_s13, [#allocation3], %s327_s15, %s327_s15, %s328_s16  }
   0xe   :  { %s329_s19 = smov [#allocation5]  }
   0xf   :  { %s28_s20 = sshll.u32 %s329_s19, 4  ;;  %s29_s20 = int_to_ptr.vmem [resolvable:$true] %s28_s20 }
  0x10   :  { %s288_s21 = scalar_lea.vmem %s29_s20, 1024  ;;  %p293_p6 = scmp.lt.s32.totalorder %s29_s20, %s29_s20 }
  0x11   :  { %p289_p5 = scmp.ne.s32.totalorder %s29_s20, %s288_s21  ;;  %p294_p7 = scmp.lt.s32.totalorder %s288_s21, %s288_s21 }
  0x13   :  { %p295_p8 = por %p294_p7, %p293_p6 }
  0x15   :  { %p296_p9 = pnand %p295_p8, %p289_p5 }
  0x17   :  { %299 = shalt.err (!%p296_p9)
}
  0x18   :  { %34 = dma.hbm_to_vmem [thread:$0]  %s368_s1, 1024, %s29_s20, [#allocation6], %s327_s15, %s327_s15, %s328_s16  }
  0x19   :  { %320 = dma.done.wait [#allocation3], 128  }
  0x1a   :  { %321 = vsyncadd [#allocation3], 4294967168 }
  0x1b   :  { %322 = dma.done.wait [#allocation6], 1024  }
  0x1c   :  { %323 = vsyncadd [#allocation6], 4294966272  ;;  %v330_v0 = vmov 0.0   ;;  %vm331_vm0 = vmmov 0   ;;  %v251_v1 = vld [vmem:[#allocation5 + $0x38] sm:$0xff]   ;;  %v252_v2 = vld [vmem:[#allocation5 + $0x30] sm:$0xff]  }
  0x1d   :  { %222 = vmatprep.subr.bf16.mxu0 %v330_v0  ;;  %238 = vmatprep.mubr.msk.bf16.mxu0 %vm331_vm0, %v330_v0  ;;  %v253_v3 = vld [vmem:[#allocation5 + $0x28] sm:$0xff]   ;;  %v254_v4 = vld [vmem:[#allocation5 + $0x20] sm:$0xff]   ;;  %v255_v5 = vld [vmem:[#allocation5 + $0x18] sm:$0xff]   ;;  %s332_s24 = smov [#allocation7]  }
  0x1e   :  { %223 = vmatpush3.bf16.msra.mxu0 %v251_v1  ;;  %v256_v6 = vld [vmem:[#allocation5 + $0x10] sm:$0xff]   ;;  %v257_v7 = vld [vmem:[#allocation5 + $0x8] sm:$0xff]   ;;  %v258_v8 = vld [vmem:[#allocation5] sm:$0xff]   ;;  %s190_s25 = sshll.u32 %s332_s24, 4  ;;  %s191_s25 = int_to_ptr.vmem [resolvable:$true] %s190_s25 }
  0x1f   :  { %224 = vmatprep.subr.bf16.mxu0 %v330_v0  ;;  %v259_v9 = vld [vmem:[#allocation2] sm:$0xff]   ;;  %s300_s26 = scalar_lea.vmem %s191_s25, 256  ;;  %p305_p11 = scmp.lt.s32.totalorder %s191_s25, %s191_s25 }
  0x20   :  { %v212_v11 = vld [vmem:[%s369_s2] ss:$0 sm:$0xff]  ;;  %p301_p10 = scmp.ne.s32.totalorder %s191_s25, %s300_s26  ;;  %p306_p12 = scmp.lt.s32.totalorder %s300_s26, %s300_s26 }
  0x22   :  { %225 = vmatpush3.bf16.msra.mxu0 %v252_v2  ;;  %p307_p13 = por %p306_p12, %p305_p11 }
  0x23   :  { %226 = vmatprep.subr.bf16.mxu0 %v330_v0 }
  0x24   :  { %p308_p0 = pnand %p307_p13, %p301_p10 }
  0x26   :  { %227 = vmatpush3.bf16.msra.mxu0 %v253_v3 }
  0x27   :  { %228 = vmatprep.subr.bf16.mxu0 %v330_v0 }
  0x2a   :  { %229 = vmatpush3.bf16.msra.mxu0 %v254_v4 }
  0x2b   :  { %230 = vmatprep.subr.bf16.mxu0 %v330_v0 }
  0x2e   :  { %231 = vmatpush3.bf16.msra.mxu0 %v255_v5 }
  0x2f   :  { %232 = vmatprep.subr.bf16.mxu0 %v330_v0 }
  0x32   :  { %233 = vmatpush3.bf16.msra.mxu0 %v256_v6 }
  0x33   :  { %234 = vmatprep.subr.bf16.mxu0 %v330_v0 }
  0x36   :  { %235 = vmatpush3.bf16.msra.mxu0 %v257_v7 }
  0x37   :  { %236 = vmatprep.subr.bf16.mxu0 %v330_v0 }
  0x3a   :  { %237 = vmatpush3.bf16.msra.mxu0 %v258_v8 }
  0x3d   :  { %239 = vmatmul.mubr.bf16.vlgmr.msra.gmra.mxu0 %v259_v9 }
  0xfd   :  { %v158_v10 = vpop.f32.mrf.mxu0 }
  0xfe   :  { %v181_v13 = vadd.f32 %v212_v11, %v158_v10 }
  0xff   :  { %v240_v12 = vpop.f32.mrf.mxu0 }
 0x100   :  { %183 = vst [vmem:[#allocation7] sm:$0xff] %v181_v13 }
 0x101   :  { %v161_v14 = vpop.f32.mrf.mxu0 }
 0x102   :  { %v182_v16 = vadd.f32 %v212_v11, %v161_v14 }
 0x103   :  { %v241_v15 = vpop.f32.mrf.mxu0 }
 0x104   :  { %184 = vst [vmem:[#allocation7 + $0x8] sm:$0xff] %v182_v16 }
 0x105   :  { %311 = shalt.err (!%p308_p0)
}
 0x106   :  { %s333_s27 = smov 128   ;;  %s334_s28 = smov 8  }
 0x107   :  { %196 = dma.vmem_to_hbm [thread:$0]  %s191_s25, 256, %s370_s3, [#allocation4], %s333_s27, %s333_s27, %s334_s28  }
 0x108   :  { %324 = dma.done.wait [#allocation4], 256  }
 0x109   :  { %325 = vsyncadd [#allocation4], 4294967040 }
 0x10a   :  { %200 = vsyncpa [#allocation3], 1 }
 0x10b   :  { %201 = vsyncpa [#allocation6], 1 }
 0x10c   :  { %202 = vsyncpa [#allocation4], 1 }

</bundles_post_ra>
